<compile_context>
chip_gen: v7x
topology: tpu7x:2x2x1
jax: 0.10.0
libtpu: 0.0.40
codegen_flags: <defaults>
</compile_context>

<pallas_src>
import functools

import jax
import jax.numpy as jnp
from jax.experimental import pallas as pl
from jax.experimental.pallas import tpu as pltpu


# ---------------------------------------------------------------------------
# Kernels
# ---------------------------------------------------------------------------
def _trunk(x_ref, masks_ref, w1_ref, b1_ref, w2_ref, b2_ref, rhs2_ref,
           *, H, W, planes):
    """conv1+BN1+ReLU then 3x3 conv2+BN2+ReLU (single stacked-tap matmul)."""
    N = H * W
    P = planes
    cdtype = x_ref.dtype
    x = x_ref[...]                                               # (Cin, N)

    # ---- conv1 (1x1, BN1 folded) + ReLU -----------------------------------
    h1 = jnp.dot(w1_ref[...], x, preferred_element_type=jnp.float32)
    h1 = jnp.maximum(h1 + b1_ref[...], 0.0).astype(cdtype)       # (P, N)

    # ---- conv2 (3x3, pad=1, stride=1, BN2 folded) + ReLU -------------------
    # One zero-padded copy of h1; each of the 9 taps is a static slice of it
    # written into the (9*P, N) scratch.  Out-of-range rows (dy) fall into the
    # zero padding; only column wrap-around (dx) needs the precomputed masks.
    pad = W + 1
    zpad = jnp.zeros((P, pad), cdtype)
    h1p = jnp.concatenate([zpad, h1, zpad], axis=1)              # (P, N + 2*pad)
    mask_l = masks_ref[0:1, :]                                   # col-1 valid
    mask_r = masks_ref[1:2, :]                                   # col+1 valid
    for t in range(9):
        dy, dx = t // 3 - 1, t % 3 - 1
        off = pad + dy * W + dx
        sh = h1p[:, off:off + N]                                 # (P, N)
        if dx == -1:
            sh = sh * mask_l
        elif dx == 1:
            sh = sh * mask_r
        rhs2_ref[t * P:(t + 1) * P, :] = sh
    # One MXU matmul with K = 9*P instead of nine K = P matmuls.
    h2 = jnp.dot(w2_ref[...], rhs2_ref[...],
                 preferred_element_type=jnp.float32)
    h2 = jnp.maximum(h2 + b2_ref[...], 0.0).astype(cdtype)       # (P, N)
    return x, h2


def _bottleneck_proj_kernel(x_ref, masks_ref, w1_ref, b1_ref, w2_ref, b2_ref,
                            w3s_ref, b3s_ref, o_ref, rhs2_ref, rhs3_ref,
                            *, H, W, planes):
    """Variant with a projection shortcut, fused into conv3's matmul."""
    P = planes
    x, h2 = _trunk(x_ref, masks_ref, w1_ref, b1_ref, w2_ref, b2_ref, rhs2_ref,
                   H=H, W=W, planes=P)
    cin = x.shape[0]
    # conv3 (1x1, BN3 folded) + projection shortcut (1x1, BN folded) fused:
    # one matmul over [h2; x] against [w3 | w_sc], single folded bias.
    rhs3_ref[0:P, :] = h2
    rhs3_ref[P:P + cin, :] = x
    out = jnp.dot(w3s_ref[...], rhs3_ref[...],
                  preferred_element_type=jnp.float32) + b3s_ref[...]
    o_ref[...] = jnp.maximum(out, 0.0).astype(o_ref.dtype)


def _bottleneck_identity_kernel(x_ref, masks_ref, w1_ref, b1_ref, w2_ref,
                                b2_ref, w3_ref, b3_ref, o_ref, rhs2_ref,
                                *, H, W, planes):
    """Variant with an identity shortcut (x added directly, no eye() matmul)."""
    x, h2 = _trunk(x_ref, masks_ref, w1_ref, b1_ref, w2_ref, b2_ref, rhs2_ref,
                   H=H, W=W, planes=planes)
    out = jnp.dot(w3_ref[...], h2,
                  preferred_element_type=jnp.float32) + b3_ref[...]
    out = out + x.astype(jnp.float32)
    o_ref[...] = jnp.maximum(out, 0.0).astype(o_ref.dtype)


# ---------------------------------------------------------------------------
# Wrapper
# ---------------------------------------------------------------------------
def _pick_vmem_limit():
    """Scoped-VMEM ceiling re-derived per chip generation (v7x: 64 MiB phys)."""
    try:
        cap = int(pltpu.get_tpu_info().vmem_capacity_bytes)
        return int(min(cap * 3 // 4, 100 * 1024 * 1024))
    except Exception:
        return 48 * 1024 * 1024


def bottleneck_forward(x, params, *, eps=1e-5):
    """x: (B, Cin, H, W).  params: conv weights + inference-mode BN stats."""
    B, Cin, H, W = x.shape
    N = H * W
    P = params["conv1_w"].shape[0]
    C4 = params["conv3_w"].shape[0]
    has_proj = "sc_conv_w" in params
    cdtype = x.dtype

    # Kernel is sized for real ResNet channel counts: sublane-aligned row-block
    # stores into the stacked-tap scratch require multiples of 8.
    assert P % 8 == 0 and Cin % 8 == 0 and C4 % 8 == 0, \
        "channel counts must be multiples of 8"
    if not has_proj:
        assert Cin == C4, "identity shortcut requires in_planes == 4*planes"

    def bn_fold(prefix):
        scale = params[prefix + "_gamma"] / jnp.sqrt(params[prefix + "_var"] + eps)
        bias = params[prefix + "_beta"] - params[prefix + "_mean"] * scale
        return scale, bias

    # Fold BN into conv weights; weights fed to the MXU in the input dtype,
    # biases kept in f32 (accumulation dtype).
    s1, b1 = bn_fold("bn1")
    w1f = (s1[:, None] * params["conv1_w"].reshape(P, Cin)).astype(cdtype)
    b1f = b1.astype(jnp.float32).reshape(P, 1)

    s2, b2 = bn_fold("bn2")
    w2s = s2[:, None, None, None] * params["conv2_w"]              # (P, P, 3, 3)
    # (Cout, kh, kw, Cin) -> (Cout, 9*Cin); tap t = kh*3 + kw matches the
    # stacked RHS row order built in the kernel.
    w2f = jnp.transpose(w2s, (0, 2, 3, 1)).reshape(P, 9 * P).astype(cdtype)
    b2f = b2.astype(jnp.float32).reshape(P, 1)

    s3, b3 = bn_fold("bn3")
    w3f = s3[:, None] * params["conv3_w"].reshape(C4, P)

    if has_proj:
        ss, bsc = bn_fold("sc_bn")
        wsf = ss[:, None] * params["sc_conv_w"].reshape(C4, Cin)
        w3s = jnp.concatenate([w3f, wsf], axis=1).astype(cdtype)   # (C4, P+Cin)
        b3s = (b3 + bsc).astype(jnp.float32).reshape(C4, 1)
    else:
        w3s = w3f.astype(cdtype)                                   # (C4, P)
        b3s = b3.astype(jnp.float32).reshape(C4, 1)

    # Column-wrap masks for the flattened H*W lane axis, precomputed on host.
    col = jnp.arange(N, dtype=jnp.int32) % W
    masks = jnp.stack([(col >= 1), (col <= W - 2)], axis=0).astype(cdtype)

    x_flat = x.reshape(B, Cin, N)

    k3 = P + Cin if has_proj else P
    flops = 2 * B * N * (P * Cin + 9 * P * P + C4 * k3)
    itm = jnp.dtype(cdtype).itemsize
    bytes_accessed = (itm * B * N * (Cin + C4)
                      + itm * (P * Cin + 9 * P * P + C4 * k3 + 2 * N)
                      + 4 * (2 * P + C4))

    weight_spec = lambda shape: pl.BlockSpec(shape, lambda b: tuple(0 for _ in shape))
    common_specs = [
        pl.BlockSpec((None, Cin, N), lambda b: (b, 0, 0)),   # x, one image/step
        pl.BlockSpec((2, N), lambda b: (0, 0)),              # column masks
        weight_spec((P, Cin)),                                # w1 (VMEM-resident)
        weight_spec((P, 1)),                                  # b1
        weight_spec((P, 9 * P)),                              # w2 stacked taps
        weight_spec((P, 1)),                                  # b2
    ]
    # TODO(synk): weights could be single-buffered (pipeline_mode) since their
    #             block index is constant; left default to keep lowering simple.

    if has_proj:
        kernel = functools.partial(_bottleneck_proj_kernel, H=H, W=W, planes=P)
        in_specs = common_specs + [weight_spec((C4, P + Cin)), weight_spec((C4, 1))]
        scratch = [pltpu.VMEM((9 * P, N), cdtype),
                   pltpu.VMEM((P + Cin, N), cdtype)]
    else:
        kernel = functools.partial(_bottleneck_identity_kernel, H=H, W=W, planes=P)
        in_specs = common_specs + [weight_spec((C4, P)), weight_spec((C4, 1))]
        scratch = [pltpu.VMEM((9 * P, N), cdtype)]

    out_flat = pl.pallas_call(
        kernel,
        out_shape=jax.ShapeDtypeStruct((B, C4, N), cdtype),
        grid_spec=pltpu.PrefetchScalarGridSpec(
            num_scalar_prefetch=0,
            grid=(B,),
            in_specs=in_specs,
            out_specs=pl.BlockSpec((None, C4, N), lambda b: (b, 0, 0)),
            scratch_shapes=scratch,
        ),
        compiler_params=pltpu.CompilerParams(
            dimension_semantics=("parallel",),
            vmem_limit_bytes=_pick_vmem_limit(),
        ),
        cost_estimate=pl.CostEstimate(
            flops=flops, transcendentals=0, bytes_accessed=bytes_accessed),
    )(x_flat, masks, w1f, b1f, w2f, b2f, w3s, b3s)

    return out_flat.reshape(B, C4, H, W)


# ---------------------------------------------------------------------------
# Pure-JAX reference (inference-mode BN)
# ---------------------------------------------------------------------------
def _reference(x, params, *, eps=1e-5):
    dn = ("NCHW", "OIHW", "NCHW")

    def conv(y, w, padding):
        return jax.lax.conv_general_dilated(
            y, w, window_strides=(1, 1), padding=padding, dimension_numbers=dn)

    def bn(y, prefix):
        s = params[prefix + "_gamma"] / jnp.sqrt(params[prefix + "_var"] + eps)
        b = params[prefix + "_beta"] - params[prefix + "_mean"] * s
        return y * s[None, :, None, None] + b[None, :, None, None]

    out = jax.nn.relu(bn(conv(x, params["conv1_w"], "VALID"), "bn1"))
    out = jax.nn.relu(bn(conv(out, params["conv2_w"], ((1, 1), (1, 1))), "bn2"))
    out = bn(conv(out, params["conv3_w"], "VALID"), "bn3")
    if "sc_conv_w" in params:
        sc = bn(conv(x, params["sc_conv_w"], "VALID"), "sc_bn")
    else:
        sc = x
    return jax.nn.relu(out + sc)


# ---------------------------------------------------------------------------
# Test
# ---------------------------------------------------------------------------
def _make_params(key, in_planes, planes, with_proj):
    C4 = 4 * planes
    it = iter(jax.random.split(key, 32))

    def uni(shape, bound):
        return jax.random.uniform(next(it), shape, jnp.float32, -bound, bound)

    def bn(prefix, c):
        return {
            prefix + "_gamma": jax.random.uniform(next(it), (c,), jnp.float32, 0.5, 1.5),
            prefix + "_beta": uni((c,), 0.5),
            prefix + "_mean": uni((c,), 0.5),
            prefix + "_var": jax.random.uniform(next(it), (c,), jnp.float32, 0.5, 1.5),
        }

    p = {
        "conv1_w": uni((planes, in_planes, 1, 1), 1.0 / in_planes ** 0.5),
        "conv2_w": uni((planes, planes, 3, 3), 1.0 / (planes * 9) ** 0.5),
        "conv3_w": uni((C4, planes, 1, 1), 1.0 / planes ** 0.5),
    }
    p.update(bn("bn1", planes))
    p.update(bn("bn2", planes))
    p.update(bn("bn3", C4))
    if with_proj:
        p["sc_conv_w"] = uni((C4, in_planes, 1, 1), 1.0 / in_planes ** 0.5)
        p.update(bn("sc_bn", C4))
    return p


if __name__ == "__main__":
    root = jax.random.PRNGKey(0)
    kp1, kp2, kx1, kx2 = jax.random.split(root, 4)

    B, planes, H, W = 2, 8, 16, 16
    C4 = 4 * planes

    # Case 1: projection shortcut (in_planes != 4*planes).
    in_planes = 8
    params1 = _make_params(kp1, in_planes, planes, with_proj=True)
    x1 = jax.random.normal(kx1, (B, in_planes, H, W), dtype=jnp.float32)
    out1 = jax.block_until_ready(bottleneck_forward(x1, params1))
    ref1 = _reference(x1, params1)
    assert out1.shape == (B, C4, H, W)
    assert jnp.allclose(out1, ref1, atol=1e-3, rtol=1e-3), "projection mismatch"

    # Case 2: identity shortcut (in_planes == 4*planes).
    in_planes2 = C4
    params2 = _make_params(kp2, in_planes2, planes, with_proj=False)
    x2 = jax.random.normal(kx2, (B, in_planes2, H, W), dtype=jnp.float32)
    out2 = jax.block_until_ready(bottleneck_forward(x2, params2))
    ref2 = _reference(x2, params2)
    assert out2.shape == (B, C4, H, W)
    assert jnp.allclose(out2, ref2, atol=1e-3, rtol=1e-3), "identity mismatch"

    print("KERNEL_OK")
</pallas_src>

<mosaic_0001>
module attributes {stable_mosaic.version = 11 : i64} {
  func.func @_bottleneck_proj_kernel(%arg0: i32, %arg1: memref<1x8x256xf32, #tpu.memory_space<vmem>>, %arg2: memref<2x256xf32, #tpu.memory_space<vmem>>, %arg3: memref<8x8xf32, #tpu.memory_space<vmem>>, %arg4: memref<8x1xf32, #tpu.memory_space<vmem>>, %arg5: memref<8x72xf32, #tpu.memory_space<vmem>>, %arg6: memref<8x1xf32, #tpu.memory_space<vmem>>, %arg7: memref<32x16xf32, #tpu.memory_space<vmem>>, %arg8: memref<32x1xf32, #tpu.memory_space<vmem>>, %arg9: memref<1x32x256xf32, #tpu.memory_space<vmem>>, %arg10: memref<72x256xf32, #tpu.memory_space<vmem>>, %arg11: memref<16x256xf32, #tpu.memory_space<vmem>>) attributes {dimension_semantics = [#tpu.dimension_semantics<parallel>], iteration_bounds = array<i64: 2>, scalar_prefetch = 0 : i64, scratch_operands = 2 : i64, tpu.core_type = #tpu.core_type<tc>, window_params = [{transform_indices = @transform_0, window_bounds = array<i64: 1, 8, 256>}, {pipeline_mode = #tpu.pipeline_mode<synchronous>, transform_indices = @transform_1, window_bounds = array<i64: 2, 256>}, {pipeline_mode = #tpu.pipeline_mode<synchronous>, transform_indices = @transform_2, window_bounds = array<i64: 8, 8>}, {pipeline_mode = #tpu.pipeline_mode<synchronous>, transform_indices = @transform_3, window_bounds = array<i64: 8, 1>}, {pipeline_mode = #tpu.pipeline_mode<synchronous>, transform_indices = @transform_4, window_bounds = array<i64: 8, 72>}, {pipeline_mode = #tpu.pipeline_mode<synchronous>, transform_indices = @transform_5, window_bounds = array<i64: 8, 1>}, {pipeline_mode = #tpu.pipeline_mode<synchronous>, transform_indices = @transform_6, window_bounds = array<i64: 32, 16>}, {pipeline_mode = #tpu.pipeline_mode<synchronous>, transform_indices = @transform_7, window_bounds = array<i64: 32, 1>}, {transform_indices = @transform_8, window_bounds = array<i64: 1, 32, 256>}]} {
    %c0 = arith.constant 0 : index
    %c0_0 = arith.constant 0 : index
    %c0_1 = arith.constant 0 : index
    %0 = vector.load %arg1[%c0, %c0_0, %c0_1] : memref<1x8x256xf32, #tpu.memory_space<vmem>>, vector<1x8x256xf32>
    %1 = vector.shape_cast %0 : vector<1x8x256xf32> to vector<8x256xf32>
    %c0_2 = arith.constant 0 : index
    %c0_3 = arith.constant 0 : index
    %2 = vector.load %arg3[%c0_2, %c0_3] : memref<8x8xf32, #tpu.memory_space<vmem>>, vector<8x8xf32>
    %cst = arith.constant dense<0.000000e+00> : vector<8x256xf32>
    %3 = tpu.matmul %2, %1, %cst {dimension_numbers = #tpu.dot_dimension_numbers<[1], [0], [0], [1], [0, 0, 1, 1], [], []>} : vector<8x8xf32>, vector<8x256xf32>, vector<8x256xf32> -> vector<8x256xf32>
    %c0_4 = arith.constant 0 : index
    %c0_5 = arith.constant 0 : index
    %4 = vector.load %arg4[%c0_4, %c0_5] : memref<8x1xf32, #tpu.memory_space<vmem>>, vector<8x1xf32>
    %5 = vector.broadcast %4 : vector<8x1xf32> to vector<8x256xf32>
    %6 = arith.addf %3, %5 : vector<8x256xf32>
    %cst_6 = arith.constant 0.000000e+00 : f32
    %7 = vector.broadcast %cst_6 : f32 to vector<8x256xf32>
    %8 = arith.maximumf %6, %7 : vector<8x256xf32>
    %cst_7 = arith.constant 0.000000e+00 : f32
    %9 = vector.broadcast %cst_7 : f32 to vector<8x17xf32>
    %10 = tpu.concatenate %9, %8, %9 in 1 : vector<8x17xf32>, vector<8x256xf32>, vector<8x17xf32> -> vector<8x290xf32>
    %c0_8 = arith.constant 0 : index
    %c0_9 = arith.constant 0 : index
    %11 = vector.load %arg2[%c0_8, %c0_9] : memref<2x256xf32, #tpu.memory_space<vmem>>, vector<1x256xf32>
    %c1 = arith.constant 1 : index
    %c0_10 = arith.constant 0 : index
    %12 = vector.load %arg2[%c1, %c0_10] : memref<2x256xf32, #tpu.memory_space<vmem>>, vector<1x256xf32>
    %13 = vector.extract_strided_slice %10 {offsets = [0, 0], sizes = [8, 256], strides = [1, 1]} : vector<8x290xf32> to vector<8x256xf32>
    %14 = vector.broadcast %11 : vector<1x256xf32> to vector<8x256xf32>
    %15 = arith.mulf %13, %14 : vector<8x256xf32>
    %c0_11 = arith.constant 0 : index
    %c0_12 = arith.constant 0 : index
    %16 = vector.load %arg10[%c0_11, %c0_12] : memref<72x256xf32, #tpu.memory_space<vmem>>, vector<8x256xf32>
    tpu.vector_store %arg10[%c0_11, %c0_12], %15 {strides = array<i32>} : memref<72x256xf32, #tpu.memory_space<vmem>>, vector<8x256xf32>,
    %17 = vector.extract_strided_slice %10 {offsets = [0, 1], sizes = [8, 256], strides = [1, 1]} : vector<8x290xf32> to vector<8x256xf32>
    %c8 = arith.constant 8 : index
    %c0_13 = arith.constant 0 : index
    %18 = vector.load %arg10[%c8, %c0_13] : memref<72x256xf32, #tpu.memory_space<vmem>>, vector<8x256xf32>
    tpu.vector_store %arg10[%c8, %c0_13], %17 {strides = array<i32>} : memref<72x256xf32, #tpu.memory_space<vmem>>, vector<8x256xf32>,
    %19 = vector.extract_strided_slice %10 {offsets = [0, 2], sizes = [8, 256], strides = [1, 1]} : vector<8x290xf32> to vector<8x256xf32>
    %20 = vector.broadcast %12 : vector<1x256xf32> to vector<8x256xf32>
    %21 = arith.mulf %19, %20 : vector<8x256xf32>
    %c16 = arith.constant 16 : index
    %c0_14 = arith.constant 0 : index
    %22 = vector.load %arg10[%c16, %c0_14] : memref<72x256xf32, #tpu.memory_space<vmem>>, vector<8x256xf32>
    tpu.vector_store %arg10[%c16, %c0_14], %21 {strides = array<i32>} : memref<72x256xf32, #tpu.memory_space<vmem>>, vector<8x256xf32>,
    %23 = vector.extract_strided_slice %10 {offsets = [0, 16], sizes = [8, 256], strides = [1, 1]} : vector<8x290xf32> to vector<8x256xf32>
    %24 = vector.broadcast %11 : vector<1x256xf32> to vector<8x256xf32>
    %25 = arith.mulf %23, %24 : vector<8x256xf32>
    %c24 = arith.constant 24 : index
    %c0_15 = arith.constant 0 : index
    %26 = vector.load %arg10[%c24, %c0_15] : memref<72x256xf32, #tpu.memory_space<vmem>>, vector<8x256xf32>
    tpu.vector_store %arg10[%c24, %c0_15], %25 {strides = array<i32>} : memref<72x256xf32, #tpu.memory_space<vmem>>, vector<8x256xf32>,
    %27 = vector.extract_strided_slice %10 {offsets = [0, 17], sizes = [8, 256], strides = [1, 1]} : vector<8x290xf32> to vector<8x256xf32>
    %c32 = arith.constant 32 : index
    %c0_16 = arith.constant 0 : index
    %28 = vector.load %arg10[%c32, %c0_16] : memref<72x256xf32, #tpu.memory_space<vmem>>, vector<8x256xf32>
    tpu.vector_store %arg10[%c32, %c0_16], %27 {strides = array<i32>} : memref<72x256xf32, #tpu.memory_space<vmem>>, vector<8x256xf32>,
    %29 = vector.extract_strided_slice %10 {offsets = [0, 18], sizes = [8, 256], strides = [1, 1]} : vector<8x290xf32> to vector<8x256xf32>
    %30 = vector.broadcast %12 : vector<1x256xf32> to vector<8x256xf32>
    %31 = arith.mulf %29, %30 : vector<8x256xf32>
    %c40 = arith.constant 40 : index
    %c0_17 = arith.constant 0 : index
    %32 = vector.load %arg10[%c40, %c0_17] : memref<72x256xf32, #tpu.memory_space<vmem>>, vector<8x256xf32>
    tpu.vector_store %arg10[%c40, %c0_17], %31 {strides = array<i32>} : memref<72x256xf32, #tpu.memory_space<vmem>>, vector<8x256xf32>,
    %33 = vector.extract_strided_slice %10 {offsets = [0, 32], sizes = [8, 256], strides = [1, 1]} : vector<8x290xf32> to vector<8x256xf32>
    %34 = vector.broadcast %11 : vector<1x256xf32> to vector<8x256xf32>
    %35 = arith.mulf %33, %34 : vector<8x256xf32>
    %c48 = arith.constant 48 : index
    %c0_18 = arith.constant 0 : index
    %36 = vector.load %arg10[%c48, %c0_18] : memref<72x256xf32, #tpu.memory_space<vmem>>, vector<8x256xf32>
    tpu.vector_store %arg10[%c48, %c0_18], %35 {strides = array<i32>} : memref<72x256xf32, #tpu.memory_space<vmem>>, vector<8x256xf32>,
    %37 = vector.extract_strided_slice %10 {offsets = [0, 33], sizes = [8, 256], strides = [1, 1]} : vector<8x290xf32> to vector<8x256xf32>
    %c56 = arith.constant 56 : index
    %c0_19 = arith.constant 0 : index
    %38 = vector.load %arg10[%c56, %c0_19] : memref<72x256xf32, #tpu.memory_space<vmem>>, vector<8x256xf32>
    tpu.vector_store %arg10[%c56, %c0_19], %37 {strides = array<i32>} : memref<72x256xf32, #tpu.memory_space<vmem>>, vector<8x256xf32>,
    %39 = vector.extract_strided_slice %10 {offsets = [0, 34], sizes = [8, 256], strides = [1, 1]} : vector<8x290xf32> to vector<8x256xf32>
    %40 = vector.broadcast %12 : vector<1x256xf32> to vector<8x256xf32>
    %41 = arith.mulf %39, %40 : vector<8x256xf32>
    %c64 = arith.constant 64 : index
    %c0_20 = arith.constant 0 : index
    %42 = vector.load %arg10[%c64, %c0_20] : memref<72x256xf32, #tpu.memory_space<vmem>>, vector<8x256xf32>
    tpu.vector_store %arg10[%c64, %c0_20], %41 {strides = array<i32>} : memref<72x256xf32, #tpu.memory_space<vmem>>, vector<8x256xf32>,
    %c0_21 = arith.constant 0 : index
    %c0_22 = arith.constant 0 : index
    %43 = vector.load %arg5[%c0_21, %c0_22] : memref<8x72xf32, #tpu.memory_space<vmem>>, vector<8x72xf32>
    %c0_23 = arith.constant 0 : index
    %c0_24 = arith.constant 0 : index
    %44 = vector.load %arg10[%c0_23, %c0_24] : memref<72x256xf32, #tpu.memory_space<vmem>>, vector<72x256xf32>
    %cst_25 = arith.constant dense<0.000000e+00> : vector<8x256xf32>
    %45 = tpu.matmul %43, %44, %cst_25 {dimension_numbers = #tpu.dot_dimension_numbers<[1], [0], [0], [1], [0, 0, 1, 1], [], []>} : vector<8x72xf32>, vector<72x256xf32>, vector<8x256xf32> -> vector<8x256xf32>
    %c0_26 = arith.constant 0 : index
    %c0_27 = arith.constant 0 : index
    %46 = vector.load %arg6[%c0_26, %c0_27] : memref<8x1xf32, #tpu.memory_space<vmem>>, vector<8x1xf32>
    %47 = vector.broadcast %46 : vector<8x1xf32> to vector<8x256xf32>
    %48 = arith.addf %45, %47 : vector<8x256xf32>
    %cst_28 = arith.constant 0.000000e+00 : f32
    %49 = vector.broadcast %cst_28 : f32 to vector<8x256xf32>
    %50 = arith.maximumf %48, %49 : vector<8x256xf32>
    %c0_29 = arith.constant 0 : index
    %c0_30 = arith.constant 0 : index
    %51 = vector.load %arg11[%c0_29, %c0_30] : memref<16x256xf32, #tpu.memory_space<vmem>>, vector<8x256xf32>
    tpu.vector_store %arg11[%c0_29, %c0_30], %50 {strides = array<i32>} : memref<16x256xf32, #tpu.memory_space<vmem>>, vector<8x256xf32>,
    %c8_31 = arith.constant 8 : index
    %c0_32 = arith.constant 0 : index
    %52 = vector.load %arg11[%c8_31, %c0_32] : memref<16x256xf32, #tpu.memory_space<vmem>>, vector<8x256xf32>
    tpu.vector_store %arg11[%c8_31, %c0_32], %1 {strides = array<i32>} : memref<16x256xf32, #tpu.memory_space<vmem>>, vector<8x256xf32>,
    %c0_33 = arith.constant 0 : index
    %c0_34 = arith.constant 0 : index
    %53 = vector.load %arg7[%c0_33, %c0_34] : memref<32x16xf32, #tpu.memory_space<vmem>>, vector<32x16xf32>
    %c0_35 = arith.constant 0 : index
    %c0_36 = arith.constant 0 : index
    %54 = vector.load %arg11[%c0_35, %c0_36] : memref<16x256xf32, #tpu.memory_space<vmem>>, vector<16x256xf32>
    %cst_37 = arith.constant dense<0.000000e+00> : vector<32x256xf32>
    %55 = tpu.matmul %53, %54, %cst_37 {dimension_numbers = #tpu.dot_dimension_numbers<[1], [0], [0], [1], [0, 0, 1, 1], [], []>} : vector<32x16xf32>, vector<16x256xf32>, vector<32x256xf32> -> vector<32x256xf32>
    %c0_38 = arith.constant 0 : index
    %c0_39 = arith.constant 0 : index
    %56 = vector.load %arg8[%c0_38, %c0_39] : memref<32x1xf32, #tpu.memory_space<vmem>>, vector<32x1xf32>
    %57 = vector.broadcast %56 : vector<32x1xf32> to vector<32x256xf32>
    %58 = arith.addf %55, %57 : vector<32x256xf32>
    %cst_40 = arith.constant 0.000000e+00 : f32
    %59 = vector.broadcast %cst_40 : f32 to vector<32x256xf32>
    %60 = arith.maximumf %58, %59 : vector<32x256xf32>
    %c0_41 = arith.constant 0 : index
    %c0_42 = arith.constant 0 : index
    %c0_43 = arith.constant 0 : index
    %61 = vector.load %arg9[%c0_41, %c0_42, %c0_43] : memref<1x32x256xf32, #tpu.memory_space<vmem>>, vector<1x32x256xf32>
    %62 = vector.shape_cast %61 : vector<1x32x256xf32> to vector<32x256xf32>
    %63 = vector.shape_cast %60 : vector<32x256xf32> to vector<1x32x256xf32>
    tpu.vector_store %arg9[%c0_41, %c0_42, %c0_43], %63 {strides = array<i32>} : memref<1x32x256xf32, #tpu.memory_space<vmem>>, vector<1x32x256xf32>,
    return
  }
  func.func @transform_0(%arg0: i32) -> (i32, i32, i32) {
    %c0_i32 = arith.constant 0 : i32
    %c0_i32_0 = arith.constant 0 : i32
    %c0_i32_1 = arith.constant 0 : i32
    return %arg0, %c0_i32, %c0_i32_0 : i32, i32, i32
  }
  func.func @transform_1(%arg0: i32) -> (i32, i32) {
    %c0_i32 = arith.constant 0 : i32
    %c0_i32_0 = arith.constant 0 : i32
    %c0_i32_1 = arith.constant 0 : i32
    return %c0_i32, %c0_i32_0 : i32, i32
  }
  func.func @transform_2(%arg0: i32) -> (i32, i32) {
    %c0_i32 = arith.constant 0 : i32
    %c0_i32_0 = arith.constant 0 : i32
    %c0_i32_1 = arith.constant 0 : i32
    return %c0_i32, %c0_i32_0 : i32, i32
  }
  func.func @transform_3(%arg0: i32) -> (i32, i32) {
    %c0_i32 = arith.constant 0 : i32
    %c0_i32_0 = arith.constant 0 : i32
    %c0_i32_1 = arith.constant 0 : i32
    return %c0_i32, %c0_i32_0 : i32, i32
  }
  func.func @transform_4(%arg0: i32) -> (i32, i32) {
    %c0_i32 = arith.constant 0 : i32
    %c0_i32_0 = arith.constant 0 : i32
    %c0_i32_1 = arith.constant 0 : i32
    return %c0_i32, %c0_i32_0 : i32, i32
  }
  func.func @transform_5(%arg0: i32) -> (i32, i32) {
    %c0_i32 = arith.constant 0 : i32
    %c0_i32_0 = arith.constant 0 : i32
    %c0_i32_1 = arith.constant 0 : i32
    return %c0_i32, %c0_i32_0 : i32, i32
  }
  func.func @transform_6(%arg0: i32) -> (i32, i32) {
    %c0_i32 = arith.constant 0 : i32
    %c0_i32_0 = arith.constant 0 : i32
    %c0_i32_1 = arith.constant 0 : i32
    return %c0_i32, %c0_i32_0 : i32, i32
  }
  func.func @transform_7(%arg0: i32) -> (i32, i32) {
    %c0_i32 = arith.constant 0 : i32
    %c0_i32_0 = arith.constant 0 : i32
    %c0_i32_1 = arith.constant 0 : i32
    return %c0_i32, %c0_i32_0 : i32, i32
  }
  func.func @transform_8(%arg0: i32) -> (i32, i32, i32) {
    %c0_i32 = arith.constant 0 : i32
    %c0_i32_0 = arith.constant 0 : i32
    %c0_i32_1 = arith.constant 0 : i32
    return %arg0, %c0_i32, %c0_i32_0 : i32, i32, i32
  }
}

</mosaic_0001>

<bundles_post_ra>
// kernel: tpu_custom_call.1
= control target key start
LH: loop header
LB: loop body
LE: loop exit
PB: predicated region body
PF: predicated region fallthrough
CT: control target
= control target key end

     0   :  { %13 = vsyncpa [#allocation5], 0  ;;  %s1417_s0 = inlined_call_operand.vmem [shape: f32[2,8,256], index: 0, kind: input, shape index: {}]   ;;  %s1418_s1 = inlined_call_operand.vmem [shape: f32[2,256], index: 1, kind: input, shape index: {}]   ;;  %s1419_s2 = inlined_call_operand.vmem [shape: f32[8,8], index: 2, kind: input, shape index: {}]   ;;  %s1420_s3 = inlined_call_operand.vmem [shape: f32[8,1], index: 3, kind: input, shape index: {}]   ;;  %s1421_s4 = inlined_call_operand.vmem [shape: f32[8,72], index: 4, kind: input, shape index: {}]   ;;  %s1422_s5 = inlined_call_operand.vmem [shape: f32[8,1], index: 5, kind: input, shape index: {}]   ;;  %s1423_s6 = inlined_call_operand.vmem [shape: f32[32,16], index: 6, kind: input, shape index: {}]   ;;  %s1424_s7 = inlined_call_operand.vmem [shape: f32[32,1], index: 7, kind: input, shape index: {}]   ;;  %s1425_s8 = inlined_call_operand.hbm [shape: f32[2,32,256], index: 8, kind: output, shape index: {}]  }
   0x1   :  { %15 = vsyncpa [#allocation5 + $0x1], 0  ;;  %s1203_s27 = smov 0   ;;  %s1205_s28 = smov 0  }
   0x2   :  { %s1207_s29 = smov 0   ;;  %s1209_s30 = smov 0  }
   0x3 LB: > { %s1224_s9 = sadd.s32 4294967295, %s1138_s30   ;;  %s942_s10 = sadd.s32 4294967294, %s1138_s30   ;;  %s1138_s30 = sphi %s1209_s30, %s1431_s30   ;;  %s1134_s29 = sphi %s1207_s29, %s1430_s29   ;;  %s1130_s28 = sphi %s1205_s28, %s1429_s28   ;;  %s1126_s27 = sphi %s1203_s27, %s1428_s27  }
   0x4   : > { %s1228_s11 = sadd.s32 1, %s1138_s30   ;;  %s201_s12 = sadd.s32 1, %s1134_s29 }
   0x5   : > { %s198_s13 = ssub.s32 %s1138_s30, %s1228_s11  ;;  %p211_p0 = scmp.ne.s32.totalorder %s1134_s29, %s1130_s28 }
   0x6   : > { %p199_p1 = scmp.eq.s32.totalorder %s198_s13, 0  ;;  %p212_p2 = scmp.eq.s32.totalorder %s1224_s9, 1 }
   0x7   : > { %p217_p3 = scmp.ne.s32.totalorder %s1130_s28, %s1126_s27  ;;  %p218_p4 = scmp.eq.s32.totalorder %s942_s10, 1 }
   0x8   : > { %s1239_s14 = scalar_select %p199_p1, %s1134_s29, %s201_s12  }
   0x9   : > { %p1241_p5 = por %p212_p2, %p211_p0  ;;  %p1245_p6 = por %p218_p4, %p217_p3 }
   0xa   : > { %p945_p7 = scmp.ge.s32.totalorder %s1138_s30, 1  ;;  %p265_p8 = scmp.lt.s32.totalorder %s1138_s30, 3 }
   0xc   : > { %p266_p9 = pnand %p945_p7, %p265_p8 }
   0xd   : > { %p299_p10 = scmp.lt.s32.totalorder (!%p266_p9), %s1224_s9, 1  ;;  %v307_v0 = vld [vmem:[%s1420_s3] sm:$0xff] (!%p266_p9)  ;;  %v1140_v1 = vmov (!%p266_p9), 0.0   ;;  %v1141_v2 = vmov (!%p266_p9), 0   ;;  %vm313_vm0 = vcmask (!%p266_p9), 64512   ;;  %v407_v6 = vlaneseq (!%p266_p9)  ;;  %s1142_s12 = smov (!%p266_p9), 2  }
   0xe   : > { %269 = sbr.rel (%p266_p9) target bundleno = 977 (0x3d1), region = 52  ;;  %381 = vmatprep.mubr.f32.mxu0 (!%p266_p9), %v1140_v1  ;;  %1039 = vset.pattern.permute.xlu0 (!%p266_p9), %v1141_v2  ;;  %v306_v5 = vld [vmem:[%s1419_s2] sm:$0xff] (!%p266_p9)  ;;  %s1143_s18 = smov (!%p266_p9), 17   ;;  %vm396_vm1 = vcmask (!%p266_p9), 138240   ;;  %vm477_vm2 = vcmask (!%p266_p9), 130048   ;;  %vm449_vm3 = vcmask (!%p266_p9), 15360  }
   0xf   : > { %310 = vperm.xlu0 (!%p266_p9), %1039, %v307_v0   ;;  %704 = vmatprep.mubr.f32.mxu1 (!%p266_p9), %v1140_v1  ;;  %v408_v7 = vshrl.u32 (!%p266_p9), %v407_v6, 7  ;;  %v950_v10 = vld [vmem:[%s1418_s1 + $0x1] ss:$2 sm:$0x3] (!%p266_p9)  ;;  %s1146_s21 = smov (!%p266_p9), 32   ;;  %s1147_s22 = smov (!%p266_p9), 34  }
  0x10   : > { %1075 = vset.pattern.permute.xlu1 (!%p266_p9), %v1141_v2  ;;  %v403_v18 = vld [vmem:[%s1418_s1] ss:$2 sm:$0x3] (!%p266_p9)  ;;  %s1149_s24 = smov (!%p266_p9), 127   ;;  %s1150_s25 = smov (!%p266_p9), 112   ;;  %vm518_vm4 = vcmask (!%p266_p9), 146432  }
  0x11   : > { %v409_v8 = vsub.s32 (!%p266_p9), 0, %v408_v7  ;;  %v413_v9 = vsub.s32 (!%p266_p9), 1, %v408_v7  ;;  %s1151_s26 = smov (!%p266_p9), 110   ;;  %vm546_vm5 = vcmask (!%p266_p9), 261120   ;;  %s1152_s10 = smov (!%p266_p9), 126   ;;  %vm587_vm6 = vcmask (!%p266_p9), 277504  }
  0x12   : > { %s1154_s13 = smov (!%p266_p9), 95   ;;  %s1155_s17 = smov (!%p266_p9), 94   ;;  %v630_v63 = vld [vmem:[%s1422_s5] sm:$0xff] (!%p266_p9)  ;;  %v726_v0 = vld [vmem:[%s1424_s7 + $0x8] sm:$0xff] (!%p266_p9)  ;;  %v728_v2 = vld [vmem:[%s1424_s7 + $0x18] sm:$0xff] (!%p266_p9)  ;;  %vm429_vm7 = vcmask (!%p266_p9), 1039360  }
  0x13   : > { %v440_v11 = vrot.slane (!%p266_p9), %v950_v10, %v409_v8  ;;  %v444_v12 = vrot.slane (!%p266_p9), %v950_v10, %v413_v9  ;;  %v1277_v21 = vrot.slane (!%p266_p9), %v403_v18, %v413_v9  ;;  %v1279_v22 = vrot.slane (!%p266_p9), %v403_v18, %v409_v8 }
  0x14   : > { %vm494_vm8 = vcmask (!%p266_p9), 916480   ;;  %vm466_vm9 = vcmask (!%p266_p9), 1031168   ;;  %vm507_vm10 = vcmask (!%p266_p9), 908288   ;;  %vm535_vm11 = vcmask (!%p266_p9), 900096  }
  0x15   : > { %s300_s19 = scalar_select %p299_p10, %s1224_s9, 1  ;;  %445 = vrot.lane.b32.xlu1 %v440_v11, %s1142_s12  ;;  %447 = vrot.lane.b32.xlu0 %v444_v12, %s1142_s12  ;;  %vm563_vm12 = vcmask 785408   ;;  %vm576_vm13 = vcmask 777216   ;;  %vm604_vm14 = vcmask 769024   ;;  %vm636_vm15 = vcmask 588800  }
  0x16   : > { %s1153_s12 = smov 96  }
  0x17   : > { %s961_s20 = sshll.u32 %s300_s19, 4  ;;  %s1144_s19 = smov 16  }
  0x18   : > { %s303_s23 = scalar_lea.vmem %s1417_s0, %s961_s20  ;;  %s1145_s20 = smov 18  }
  0x19   : > { %v1261_v3 = vld [vmem:[%s303_s23 + $0x8] sm:$0xff]  ;;  %v1263_v4 = vld [vmem:[%s303_s23] sm:$0xff]  ;;  %s1148_s23 = smov 111  }
  0x1a   : > { %317 = vmatprep.subr.mxu0 %v1261_v3 }
  0x1b   : > { %318 = vmatpush1.msra.mxu0 %v1263_v4 }
  0x1c   : > { %949 = vmatmul.mubr.msk.f32.vlgmr.msra.gmra.mrb[0].mxu0 %vm313_vm0, %v306_v5 }
  0x1d   : > { %825 = vmatprep.mubr.f32.mxu0 %v1140_v1 }
  0x87   : > { %v446_v24 = vpop.permute.xlu1 %445 }
  0x8e   : > { %v311_v13 = vpop.permute.xlu0 %310 }
  0x92   : > { %v448_v23 = vpop.permute.xlu0 %447 }
  0x93   : > { %v450_v39 = vsel %vm449_vm3, %v446_v24, %v448_v23 }
  0xef   : > { %v383_v14 = vpop.f32.mrb[0].mxu0 }
  0xf0   : > { %v384_v15 = vadd.f32 %v383_v14, %v311_v13  ;;  %v385_v16 = vpop.f32.mrb[1].mxu0 }
  0xf1   : > { %v386_v17 = vadd.f32 %v385_v16, %v311_v13 }
  0xf2   : > { %v388_v19 = vmax.f32 %v384_v15, 0.0 }
  0xf3   : > { %v389_v20 = vmax.f32 %v386_v17, 0.0 }
  0xf4   : > { %392 = vrot.lane.b32.xlu0 %v388_v19, %s1143_s18 }
  0xf5   : > { %394 = vrot.lane.b32.xlu1 %v389_v20, %s1143_s18 }
  0xf8   : > { %475 = vrot.lane.b32.xlu0 %v1277_v21, %s1144_s19 }
  0xf9   : > { %473 = vrot.lane.b32.xlu1 %v1279_v22, %s1144_s19 }
  0xfc   : > { %516 = vrot.lane.b32.xlu0 %v444_v12, %s1145_s20 }
  0xfd   : > { %514 = vrot.lane.b32.xlu1 %v440_v11, %s1145_s20 }
 0x100   : > { %544 = vrot.lane.b32.xlu0 %v1277_v21, %s1146_s21 }
 0x101   : > { %542 = vrot.lane.b32.xlu1 %v1279_v22, %s1146_s21 }
 0x104   : > { %585 = vrot.lane.b32.xlu0 %v444_v12, %s1147_s22 }
 0x105   : > { %583 = vrot.lane.b32.xlu1 %v440_v11, %s1147_s22 }
 0x166   : > { %v393_v25 = vpop.permute.xlu0 %392 }
 0x167   : > { %v1287_v26 = vsel %vm396_vm1, 0.0, %v393_v25  ;;  %v395_v27 = vpop.permute.xlu1 %394 }
 0x168   : > { %v1289_v28 = vsel %vm396_vm1, %v393_v25, %v395_v27  ;;  %v402_v29 = vsel %vm396_vm1, %v395_v27, 0.0  ;;  %501 = vrot.lane.b32.xlu1 %v1287_v26, %s1148_s23  ;;  %423 = vrot.lane.b32.xlu0 %v1287_v26, %s1149_s24  ;;  %v454_v42 = vmul.f32 %v446_v24, %v1287_v26  ;;  %v417_v12 = vmul.f32 %v1279_v22, %v1287_v26 }
 0x169   : > { %v1040_v30 = vpack.i.bf16 %v402_v29, %v1289_v28  ;;  %v455_v43 = vmul.f32 %v450_v39, %v1289_v28  ;;  %v456_v44 = vmul.f32 %v448_v23, %v402_v29  ;;  %v418_v11 = vmul.f32 %v1277_v21, %v1289_v28 }
 0x16a   : > { %v476_v31 = vpop.permute.xlu0 %475 }
 0x16b   : > { %v474_v32 = vpop.permute.xlu1 %473  ;;  %v484_v41 = vmul.f32 %v476_v31, %v402_v29  ;;  %v1050_v50 = vpack.i.bf16 %v456_v44, %v455_v43 }
 0x16c   : > { %v482_v33 = vmul.f32 %v474_v32, %v1287_v26  ;;  %1041 = vrot.lane.b32.xlu1 %v1040_v30, %s1149_s24  ;;  %v478_v34 = vsel %vm477_vm2, %v474_v32, %v476_v31  ;;  %s1156_s24 = smov [#allocation4]  }
 0x16d   : > { %v483_v37 = vmul.f32 %v478_v34, %v1289_v28 }
 0x16e   : > { %488 = vrot.lane.b32.xlu0 %v482_v33, %s1150_s25  ;;  %v517_v35 = vpop.permute.xlu0 %516 }
 0x16f   : > { %v515_v36 = vpop.permute.xlu1 %514  ;;  %v1055_v48 = vpack.i.bf16 %v484_v41, %v483_v37  ;;  %v525_v49 = vmul.f32 %v517_v35, %v402_v29 }
 0x170   : > { %v523_v38 = vmul.f32 %v515_v36, %v1287_v26  ;;  %1046 = vrot.lane.b32.xlu1 %v1040_v30, %s1148_s23  ;;  %v519_v40 = vsel %vm518_vm4, %v515_v36, %v517_v35 }
 0x171   : > { %v524_v45 = vmul.f32 %v519_v40, %v1289_v28 }
 0x172   : > { %529 = vrot.lane.b32.xlu0 %v523_v38, %s1151_s26  ;;  %v545_v46 = vpop.permute.xlu0 %544 }
 0x173   : > { %v543_v47 = vpop.permute.xlu1 %542  ;;  %v1060_v52 = vpack.i.bf16 %v525_v49, %v524_v45  ;;  %v553_v55 = vmul.f32 %v545_v46, %v402_v29 }
 0x174   : > { %460 = vrot.lane.b32.xlu1 %v454_v42, %s1152_s10  ;;  %v547_v51 = vsel %vm546_vm5, %v543_v47, %v545_v46  ;;  %v551_v53 = vmul.f32 %v543_v47, %v1287_v26 }
 0x175   : > { %v552_v54 = vmul.f32 %v547_v51, %v1289_v28 }
 0x176   : > { %1056 = vrot.lane.b32.xlu0 %v1055_v48, %s1150_s25  ;;  %v586_v56 = vpop.permute.xlu0 %585  ;;  %s1080_s25 = sshll.u32 %s1156_s24, 4  ;;  %s1081_s25 = int_to_ptr.vmem [resolvable:$false] %s1080_s25 }
 0x177   : > { %v584_v57 = vpop.permute.xlu1 %583  ;;  %v1070_v58 = vpack.i.bf16 %v553_v55, %v552_v54  ;;  %v594_v61 = vmul.f32 %v586_v56, %v402_v29 }
 0x178   : > { %1051 = vrot.lane.b32.xlu1 %v1050_v50, %s1152_s10  ;;  %v588_v59 = vsel %vm587_vm6, %v584_v57, %v586_v56  ;;  %v592_v62 = vmul.f32 %v584_v57, %v1287_v26  ;;  %s296_s10 = sand.u32 1, %s1130_s28  }
 0x179   : > { %v593_v60 = vmul.f32 %v588_v59, %v1289_v28 }
 0x17a   : > { %1061 = vrot.lane.b32.xlu0 %v1060_v52, %s1151_s26  ;;  %s1082_s26 = scalar_lea.vmem %s1081_s25, 2048 }
 0x17c   : > { %557 = vrot.lane.b32.xlu1 %v551_v53, %s1153_s12 }
 0x17e   : > { %1066 = vrot.lane.b32.xlu0 %v1040_v30, %s1154_s13 }
 0x180   : > { %1071 = vrot.lane.b32.xlu1 %v1070_v58, %s1153_s12  ;;  %s946_s12 = sshll.u32 %s296_s10, 6 }
 0x182   : > { %570 = vrot.lane.b32.xlu0 %v1287_v26, %s1154_s13  ;;  %s1354_s13 = scalar_lea.vmem [#allocation4], %s946_s12 }
 0x183   : > { %s880_s18 = sshll.u32 %s1354_s13, 4  ;;  %s1369_s18 = int_to_ptr.vmem [resolvable:$true] %s880_s18 }
 0x184   : > { %600 = vrot.lane.b32.xlu1 %v593_v60, %s1155_s17  ;;  %s1076_s23 = scalar_lea.vmem %s1369_s18, 1024  ;;  %p1083_p0 = scmp.lt.s32.totalorder %s1369_s18, %s1081_s25 }
 0x185   : > { %p1077_p11 = scmp.ne.s32.totalorder %s1369_s18, %s1076_s23  ;;  %p1084_p1 = scmp.lt.s32.totalorder %s1082_s26, %s1076_s23 }
 0x186   : > { %602 = vrot.lane.b32.xlu0 %v594_v61, %s1155_s17 }
 0x187   : > { %p1078_p12 = pnand %p1077_p11, %p1241_p5  ;;  %p1085_p2 = por %p1084_p1, %p1083_p0 }
 0x188   : > { %598 = vrot.lane.b32.xlu1 %v592_v62, %s1155_s17  ;;  %v611_v62 = vld [vmem:[%s1421_s4] sm:$0xff]  ;;  %s962_s17 = sshll.u32 %s1224_s9, 10  ;;  %s1375_s9 = scalar_lea.sflag [#allocation5], %s296_s10 }
 0x189   : > { %s1367_s22 = scalar_lea.hbm %s1425_s8, %s962_s17  ;;  %p1079_p13 = pneg %p1078_p12 }
 0x18a   : > { %633 = vperm.xlu0 %1039, %v630_v63   ;;  %v725_v63 = vld [vmem:[%s1424_s7] sm:$0xff] }
 0x18b   : > { %p1086_p3 = pnand %p1085_p2, %p1079_p13 }
 0x18c   : > { %731 = vperm.xlu1 %1075, %v725_v63  }
 0x18e   : > { %736 = vperm.xlu0 %1039, %v726_v0   ;;  %v727_v0 = vld [vmem:[%s1424_s7 + $0x10] sm:$0xff] }
 0x190   : > { %741 = vperm.xlu1 %1075, %v727_v0  }
 0x192   : > { %746 = vperm.xlu0 %1039, %v728_v2  }
 0x1da   : > { %v502_v5 = vpop.permute.xlu1 %501  ;;  %v424_v6 = vpop.permute.xlu0 %423 }
 0x1de   : > { %v1042_v7 = vpop.permute.xlu1 %1041 }
 0x1df   : > { %v1044_v8 = vunpack.i.h.bf16 %v1042_v7  ;;  %v1043_v9 = vunpack.i.l.bf16 %v1042_v7 }
 0x1e0   : > { %v489_v10 = vpop.permute.xlu0 %488 }
 0x1e1   : > { %v431_v13 = vsel %vm429_vm7, %v1043_v9, %v1044_v8  ;;  %v430_v14 = vsel %vm429_vm7, %v424_v6, %v1043_v9 }
 0x1e2   : > { %v1047_v15 = vpop.permute.xlu1 %1046  ;;  %v963_v16 = vpack.c.bf16 %v431_v13, %v418_v11  ;;  %v965_v17 = vpack.c.bf16 %v430_v14, %v417_v12  ;;  %v717_v13 = vld [vmem:[%s1423_s6] sm:$0xff]  ;;  %v718_v14 = vld [vmem:[%s1423_s6 + $0x8] sm:$0xff] }
 0x1e3   : > { %v1049_v27 = vunpack.i.h.bf16 %v1047_v15  ;;  %v1048_v21 = vunpack.i.l.bf16 %v1047_v15 }
 0x1e4   : > { %964 = vmatprep.subr.bf16.mxu1 %v963_v16  ;;  %v530_v18 = vpop.permute.xlu0 %529 }
 0x1e5   : > { %966 = vmatpush1.bf16.msra.mxu1 %v965_v17  ;;  %v509_v38 = vsel %vm507_vm10, %v1048_v21, %v1049_v27  ;;  %v508_v46 = vsel %vm507_vm10, %v502_v5, %v1048_v21 }
 0x1e6   : > { %v461_v19 = vpop.permute.xlu1 %460 }
 0x1e8   : > { %v1057_v20 = vpop.permute.xlu0 %1056 }
 0x1e9   : > { %v1059_v23 = vunpack.i.h.bf16 %v1057_v20  ;;  %v1058_v24 = vunpack.i.l.bf16 %v1057_v20 }
 0x1ea   : > { %v1052_v25 = vpop.permute.xlu1 %1051 }
 0x1eb   : > { %v1054_v28 = vunpack.i.h.bf16 %v1052_v25  ;;  %v1053_v29 = vunpack.i.l.bf16 %v1052_v25  ;;  %v496_v26 = vsel %vm494_vm8, %v1058_v24, %v1059_v23  ;;  %v495_v30 = vsel %vm494_vm8, %v489_v10, %v1058_v24 }
 0x1ec   : > { %v1062_v22 = vpop.permute.xlu0 %1061 }
 0x1ed   : > { %v1064_v31 = vunpack.i.h.bf16 %v1062_v22  ;;  %v1063_v32 = vunpack.i.l.bf16 %v1062_v22  ;;  %v468_v33 = vsel %vm466_vm9, %v1053_v29, %v1054_v28  ;;  %v467_v34 = vsel %vm466_vm9, %v461_v19, %v1053_v29 }
 0x1ee   : > { %v558_v35 = vpop.permute.xlu1 %557  ;;  %v967_v36 = vpack.c.bf16 %v496_v26, %v468_v33  ;;  %v969_v37 = vpack.c.bf16 %v495_v30, %v467_v34 }
 0x1ef   : > { %v537_v39 = vsel %vm535_vm11, %v1063_v32, %v1064_v31  ;;  %v536_v42 = vsel %vm535_vm11, %v530_v18, %v1063_v32 }
 0x1f0   : > { %v1067_v40 = vpop.permute.xlu0 %1066  ;;  %968 = vmatprep.subr.bf16.mxu1 %v967_v36  ;;  %v971_v41 = vpack.c.bf16 %v537_v39, %v509_v38  ;;  %v973_v49 = vpack.c.bf16 %v536_v42, %v508_v46 }
 0x1f1   : > { %v1069_v43 = vunpack.i.h.bf16 %v1067_v40  ;;  %v1068_v44 = vunpack.i.l.bf16 %v1067_v40  ;;  %970 = vmatpush1.bf16.msra.mxu1 %v969_v37 }
 0x1f2   : > { %v1072_v45 = vpop.permute.xlu1 %1071  ;;  %972 = vmatprep.subr.bf16.mxu1 %v971_v41 }
 0x1f3   : > { %v1074_v47 = vunpack.i.h.bf16 %v1072_v45  ;;  %v1073_v48 = vunpack.i.l.bf16 %v1072_v45  ;;  %v578_v54 = vsel %vm576_vm13, %v1068_v44, %v1069_v43 }
 0x1f4   : > { %v571_v50 = vpop.permute.xlu0 %570 }
 0x1f5   : > { %v564_v51 = vsel %vm563_vm12, %v558_v35, %v1073_v48  ;;  %v577_v52 = vsel %vm576_vm13, %v571_v50, %v1068_v44  ;;  %974 = vmatpush1.bf16.msra.mxu1 %v973_v49  ;;  %v565_v53 = vsel %vm563_vm12, %v1073_v48, %v1074_v47 }
 0x1f6   : > { %v977_v55 = vpack.c.bf16 %v577_v52, %v564_v51  ;;  %v601_v56 = vpop.permute.xlu1 %600  ;;  %v975_v57 = vpack.c.bf16 %v578_v54, %v565_v53 }
 0x1f8   : > { %v603_v58 = vpop.permute.xlu0 %602  ;;  %976 = vmatprep.subr.bf16.mxu1 %v975_v57 }
 0x1f9   : > { %978 = vmatpush1.bf16.msra.mxu1 %v977_v55  ;;  %v606_v59 = vsel %vm604_vm14, %v601_v56, %v603_v58 }
 0x1fa   : > { %v599_v60 = vpop.permute.xlu1 %598  ;;  %656 = vmatprep.subr.mxu1 %v606_v59 }
 0x1fb   : > { %v605_v61 = vsel %vm604_vm14, %v599_v60, %v601_v56 }
 0x1fd   : > { %657 = vmatpush1.msra.mxu1 %v605_v61 }
 0x1fe   : > { %951 = vmatmul.mubr.msk.f32.vlgmr.msra.gmra.mrb[0].mxu1 %vm636_vm15, %v611_v62 }
 0x209   : > { %v634_v2 = vpop.permute.xlu0 %633 }
 0x20b   : > { %v732_v15 = vpop.permute.xlu1 %731 }
 0x20d   : > { %v737_v23 = vpop.permute.xlu0 %736 }
 0x20f   : > { %v742_v28 = vpop.permute.xlu1 %741 }
 0x211   : > { %v747_v34 = vpop.permute.xlu0 %746 }
 0x2d1   : > { %v706_v5 = vpop.f32.mrb[0].mxu1 }
 0x2d2   : > { %v707_v6 = vadd.f32 %v706_v5, %v634_v2  ;;  %v708_v7 = vpop.f32.mrb[1].mxu1 }
 0x2d3   : > { %v709_v8 = vadd.f32 %v708_v7, %v634_v2 }
 0x2d4   : > { %v711_v9 = vmax.f32 %v707_v6, 0.0 }
 0x2d5   : > { %v712_v10 = vmax.f32 %v709_v8, 0.0 }
 0x2d6   : > { %v981_v12 = vpack.c.bf16 %v1263_v4, %v711_v9  ;;  %v720_v4 = vld [vmem:[%s1423_s6 + $0x18] sm:$0xff] }
 0x2d7   : > { %v979_v11 = vpack.c.bf16 %v1261_v3, %v712_v10  ;;  %v719_v3 = vld [vmem:[%s1423_s6 + $0x10] sm:$0xff] }
 0x2d9   : > { %980 = vmatprep.subr.bf16.mxu0 %v979_v11 }
 0x2da   : > { %982 = vmatpush1.bf16.msra.mxu0 %v981_v12 }
 0x2dd   : > { %952 = vmatmul.mubr.msk.f32.vlgmr.msra.gmra.mrb[2].mxu0 %vm477_vm2, %v717_v13 }
 0x2de   : > { %831 = vmatprep.mubr.f32.mxu0 %v1140_v1 }
 0x2e1   : > { %953 = vmatmul.mubr.msk.f32.gmra.mrb[4].mxu0 %vm477_vm2, %v718_v14 }
 0x2e2   : > { %837 = vmatprep.mubr.f32.mxu0 %v1140_v1 }
 0x2e5   : > { %954 = vmatmul.mubr.msk.f32.gmra.mrb[6].mxu0 %vm477_vm2, %v719_v3 }
 0x2e6   : > { %843 = vmatprep.mubr.f32.mxu0 %v1140_v1 }
 0x2e9   : > { %955 = vmatmul.mubr.msk.f32.gmra.mrb[8].mxu0 %vm477_vm2, %v720_v4 }
 0x3b0   : > { %v827_v16 = vpop.f32.mrb[2].mxu0 }
 0x3b1   : > { %v828_v17 = vadd.f32 %v827_v16, %v732_v15  ;;  %v829_v18 = vpop.f32.mrb[3].mxu0 }
 0x3b2   : > { %v830_v19 = vadd.f32 %v829_v18, %v732_v15 }
 0x3b3   : > { %v850_v20 = vmax.f32 %v828_v17, 0.0 }
 0x3b4   : > { %v851_v24 = vmax.f32 %v830_v19, 0.0  ;;  %v833_v25 = vpop.f32.mrb[4].mxu0 }
 0x3b5   : > { %858 = vst [vmem:[%s1354_s13] sm:$0xff] %v850_v20  ;;  %v834_v1 = vadd.f32 %v833_v25, %v737_v23  ;;  %v835_v27 = vpop.f32.mrb[5].mxu0 }
 0x3b6   : > { %859 = vst [vmem:[%s1354_s13 + $0x8] sm:$0xff] %v851_v24  ;;  %v836_v21 = vadd.f32 %v835_v27, %v737_v23 }
 0x3b7   : > { %v852_v29 = vmax.f32 %v834_v1, 0.0 }
 0x3b8   : > { %v853_v22 = vmax.f32 %v836_v21, 0.0  ;;  %v839_v26 = vpop.f32.mrb[6].mxu0 }
 0x3b9   : > { %860 = vst [vmem:[%s1354_s13 + $0x10] sm:$0xff] %v852_v29  ;;  %v840_v30 = vadd.f32 %v839_v26, %v742_v28  ;;  %v841_v31 = vpop.f32.mrb[7].mxu0 }
 0x3ba   : > { %861 = vst [vmem:[%s1354_s13 + $0x18] sm:$0xff] %v853_v22  ;;  %v842_v32 = vadd.f32 %v841_v31, %v742_v28 }
 0x3bb   : > { %v854_v33 = vmax.f32 %v840_v30, 0.0 }
 0x3bc   : > { %v855_v35 = vmax.f32 %v842_v32, 0.0  ;;  %v845_v36 = vpop.f32.mrb[8].mxu0 }
 0x3bd   : > { %862 = vst [vmem:[%s1354_s13 + $0x20] sm:$0xff] %v854_v33  ;;  %v846_v37 = vadd.f32 %v845_v36, %v747_v34  ;;  %v847_v38 = vpop.f32.mrb[9].mxu0 }
 0x3be   : > { %863 = vst [vmem:[%s1354_s13 + $0x28] sm:$0xff] %v855_v35  ;;  %v848_v39 = vadd.f32 %v847_v38, %v747_v34 }
 0x3bf   : > { %v856_v40 = vmax.f32 %v846_v37, 0.0 }
 0x3c0   : > { %v857_v41 = vmax.f32 %v848_v39, 0.0 }
 0x3c1   : > { %864 = vst [vmem:[%s1354_s13 + $0x30] sm:$0xff] %v856_v40 }
 0x3c2   : > { %865 = vst [vmem:[%s1354_s13 + $0x38] sm:$0xff] %v857_v41 }
 0x3c3   : > { %1089 = shalt.err (!%p1086_p3)
}
 0x3c4   : > { %s1090_s10 = scalar_lea.hbm %s1367_s22, 1024  ;;  %s1094_s17 = scalar_lea.hbm %s1425_s8, 2048 }
 0x3c5   : > { %p1091_p4 = scmp.ne.s32.totalorder %s1367_s22, %s1090_s10  ;;  %p1095_p9 = scmp.lt.u32.totalorder %s1367_s22, %s1425_s8 }
 0x3c6   : > { %p1096_p10 = scmp.lt.u32.totalorder %s1094_s17, %s1090_s10  ;;  %p1098_p12 = scmp.lt.u32.totalorder %s1090_s10, %s1367_s22 }
 0x3c7   : > { %p1092_p7 = pnand %p1091_p4, %p1241_p5 }
 0x3c8   : > { %p1097_p11 = por %p1096_p10, %p1095_p9 }
 0x3c9   : > { %p1093_p8 = pneg %p1092_p7 }
 0x3ca   : > { %p1099_p13 = por %p1098_p12, %p1097_p11 }
 0x3cc   : > { %p1100_p0 = pnand %p1099_p13, %p1093_p8 }
 0x3ce   : > { %1103 = shalt.err (!%p1100_p0)
}
 0x3cf   : > { %s1157_s23 = smov 256  }
 0x3d0   : > { %983 = dma.vmem_to_hbm [thread:$0]  (%p1241_p5), %s1369_s18, 1024, %s1367_s22, %s1375_s9, %s1157_s23, %s1157_s23, %s1144_s19  }
 0x3d1 PF: > { %p989_p1 = scmp.ge.s32.totalorder %s1138_s30, 2  ;;  %s895_s24 = sand.u32 1, %s1126_s27  }
 0x3d2   : > { %s896_s25 = scalar_lea.sflag [#allocation5], %s895_s24 }
 0x3d3   : > { %p986_p2 = pnand %p989_p1, %p1245_p6 }
 0x3d5   : > { %1121 = dma.done.wait (!%p986_p2), %s896_s25, 1024  }
 0x3d6   : > { %1123 = vsyncadd (!%p986_p2), %s896_s25, 4294966272  ;;  %p18_p3 = scmp.ge.s32.totalorder %s1228_s11, 4   ;;  %s1428_s27 = smov %s1130_s28 }
 0x3d7   : > { %s1429_s28 = smov %s1134_s29  ;;  %s1430_s29 = smov %s1239_s14 }
 0x3d8   : > { %s1431_s30 = smov %s1228_s11  ;;  %20 = sbr.rel (!%p18_p3) target bundleno = 3 (0x3), region = 88 }
 0x3df   :  { %901 = vsyncpa [#allocation5], 1 }
 0x3e0   :  { %903 = vsyncpa [#allocation5 + $0x1], 1 }

</bundles_post_ra>
